<compile_context>
chip_gen: v5e
topology: v5e:2x2
jax: 0.10.0
libtpu: 0.0.40
codegen_flags: <defaults>
</compile_context>

<pallas_src>
import functools

import jax
import jax.numpy as jnp
from jax.experimental import pallas as pl
from jax.experimental.pallas import tpu as pltpu


def _gdl_partial_kernel(x_ref, t_ref, o_ref, ts_acc, it_acc, xs_acc, *,
                        tile_s, s_tiles_per_chunk, num_s_tiles, tail_rem,
                        needs_mask, chunk_overrun):
    """Accumulate per-row (= per (n, c)) partial sums over one spatial chunk.

    x_ref, t_ref : (row_block, tile_s) VMEM tiles (native dtype)
    o_ref        : (1, row_block, 3) partial sums for (chunk p, row block r):
                   [..., 0] = sum(t), [..., 1] = sum(x*t), [..., 2] = sum(x)
    ts/it/xs_acc : (row_block, 1) f32 scratch accumulators (persist across si)
    """
    p = pl.program_id(1)           # spatial chunk (parallel)
    si = pl.program_id(2)          # s-tile within the chunk (reduction)
    gsi = p * s_tiles_per_chunk + si
    last_valid = num_s_tiles - 1

    @pl.when(si == 0)
    def _init():
        ts_acc[...] = jnp.zeros_like(ts_acc)
        it_acc[...] = jnp.zeros_like(it_acc)
        xs_acc[...] = jnp.zeros_like(xs_acc)

    # In-register cast keeps HBM traffic at the native (possibly narrow) dtype.
    x = x_ref[...].astype(jnp.float32)        # (row_block, tile_s)
    t = t_ref[...].astype(jnp.float32)

    def accumulate(xv, tv):
        ts_acc[...] += jnp.sum(tv, axis=-1, keepdims=True)
        it_acc[...] += jnp.sum(xv * tv, axis=-1, keepdims=True)
        xs_acc[...] += jnp.sum(xv, axis=-1, keepdims=True)

    if needs_mask or chunk_overrun:
        # Full tiles: unmasked accumulate.  Tiles past the last valid spatial
        # tile (possible when chunks over-cover S) are skipped entirely.
        full_pred = (gsi < last_valid) if needs_mask else (gsi <= last_valid)

        @pl.when(full_pred)
        def _full():
            accumulate(x, t)
    else:
        accumulate(x, t)

    if needs_mask:
        # Only the single ragged tail tile pays for the mask.
        @pl.when(gsi == last_valid)
        def _tail():
            lane = jax.lax.broadcasted_iota(jnp.int32, (1, tile_s), 1)
            keep = lane < tail_rem            # tail_rem is a static constant
            accumulate(jnp.where(keep, x, 0.0), jnp.where(keep, t, 0.0))

    @pl.when(si == pl.num_programs(2) - 1)
    def _store():
        o_ref[0, :, 0:1] = ts_acc[...]
        o_ref[0, :, 1:2] = it_acc[...]
        o_ref[0, :, 2:3] = xs_acc[...]


def generalized_dice_loss(inputs, targets, epsilon=1e-05, tile_s=None,
                          spatial_chunks=None, vmem_budget_bytes=8 << 20):
    """Forward pass of GeneralizedDiceLoss (weight=None, ignore_index=None)."""
    assert inputs.shape == targets.shape, \
        "'input' and 'target' must have the same shape"
    # TODO(synk): ignore_index masking and per-class `weight` are None by
    # default in the module and are not implemented here.

    N, C = inputs.shape[0], inputs.shape[1]
    S = 1
    for d in inputs.shape[2:]:
        S *= d
    NC = N * C

    # Free contiguous reshapes: no transpose, pad, or dtype cast in the wrapper.
    x = inputs.reshape(NC, S)
    t = targets.reshape(NC, S)

    bytes_x = inputs.dtype.itemsize
    bytes_t = targets.dtype.itemsize

    # Row blocking: 8 sublanes fully used (or all rows if NC < 8).
    row_block = 8 if NC >= 8 else NC
    num_r = pl.cdiv(NC, row_block)

    # Spatial tile from VMEM budget (2 inputs x double buffer), 128-aligned.
    if tile_s is None:
        tile_s = vmem_budget_bytes // (2 * row_block * (bytes_x + bytes_t))
    tile_s = (int(tile_s) // 128) * 128
    tile_s = max(128, min(tile_s, pl.cdiv(S, 128) * 128))
    num_s = pl.cdiv(S, tile_s)
    needs_mask = (S % tile_s) != 0
    tail_rem = S - (num_s - 1) * tile_s

    # Megacore: if the row axis gives only one parallel block, split the
    # spatial reduction into 2 parallel chunks (partials summed in finalize).
    if spatial_chunks is None:
        spatial_chunks = 1 if (num_r >= 2 or num_s < 2) else 2
    P = max(1, min(int(spatial_chunks), num_s))
    s_per_chunk = pl.cdiv(num_s, P)
    chunk_overrun = (P * s_per_chunk) > num_s

    kernel = functools.partial(
        _gdl_partial_kernel,
        tile_s=tile_s, s_tiles_per_chunk=s_per_chunk, num_s_tiles=num_s,
        tail_rem=tail_rem, needs_mask=needs_mask, chunk_overrun=chunk_overrun)

    def in_index_map(r, p, s):
        gsi = p * s_per_chunk + s
        # Clamp so over-covering chunks never request a fully OOB block
        # (their contribution is skipped inside the kernel anyway).
        return (r, jnp.minimum(gsi, num_s - 1))

    vmem_est = 2 * row_block * tile_s * (bytes_x + bytes_t) + (2 << 20)
    vmem_limit = int(min(max(2 * vmem_est, 16 << 20), 48 << 20))

    cost = pl.CostEstimate(
        flops=int(4 * NC * S),
        transcendentals=0,
        bytes_accessed=int(NC * S * (bytes_x + bytes_t) + P * NC * 3 * 4),
    )

    partials = pl.pallas_call(
        kernel,
        out_shape=jax.ShapeDtypeStruct((P, NC, 3), jnp.float32),
        grid_spec=pltpu.PrefetchScalarGridSpec(
            num_scalar_prefetch=0,
            grid=(num_r, P, s_per_chunk),
            in_specs=[
                pl.BlockSpec((row_block, tile_s), in_index_map),
                pl.BlockSpec((row_block, tile_s), in_index_map),
            ],
            out_specs=pl.BlockSpec((1, row_block, 3), lambda r, p, s: (p, r, 0)),
            scratch_shapes=[
                pltpu.VMEM((row_block, 1), jnp.float32),  # sum(targets)
                pltpu.VMEM((row_block, 1), jnp.float32),  # sum(inputs * targets)
                pltpu.VMEM((row_block, 1), jnp.float32),  # sum(inputs)
            ],
        ),
        compiler_params=pltpu.CompilerParams(
            dimension_semantics=("parallel", "parallel", "arbitrary"),
            vmem_limit_bytes=vmem_limit,
        ),
        cost_estimate=cost,
    )(x, t)

    # Tiny O(N*C) finalize in plain JAX (negligible vs. the streamed reduction).
    sums = partials.sum(axis=0).reshape(N, C, 3).sum(axis=0)   # (C, 3)
    target_sum = sums[:, 0]
    intersect_sum = sums[:, 1]
    input_sum = sums[:, 2]
    class_w = 1.0 / jnp.maximum(target_sum * target_sum, epsilon)
    intersect = intersect_sum * class_w
    denominator = jnp.maximum((input_sum + target_sum) * class_w, epsilon)
    return jnp.mean(1.0 - 2.0 * intersect / denominator)


def _reference(inputs, targets, epsilon=1e-05):
    """Pure-JAX reference matching the PyTorch module exactly."""
    C = inputs.shape[1]
    perm = (1, 0) + tuple(range(2, inputs.ndim))
    x = jnp.transpose(inputs, perm).reshape(C, -1).astype(jnp.float32)
    t = jnp.transpose(targets, perm).reshape(C, -1).astype(jnp.float32)
    target_sum = t.sum(-1)
    class_w = 1.0 / jnp.maximum(target_sum * target_sum, epsilon)
    intersect = (x * t).sum(-1) * class_w
    denom = jnp.maximum((x + t).sum(-1) * class_w, epsilon)
    return jnp.mean(1.0 - 2.0 * intersect / denom)


if __name__ == "__main__":
    key = jax.random.PRNGKey(0)
    k1, k2, k3, k4, k5, k6 = jax.random.split(key, 6)

    # Test 1: small 3-D segmentation shape, f32, default tiling.
    N, C, D, H, W = 2, 4, 4, 8, 8
    inputs = jax.random.uniform(k1, (N, C, D, H, W), dtype=jnp.float32)
    targets = (jax.random.uniform(k2, (N, C, D, H, W)) > 0.5).astype(jnp.float32)
    loss = jax.block_until_ready(jax.jit(generalized_dice_loss)(inputs, targets))
    ref = _reference(inputs, targets)
    assert jnp.allclose(loss, ref, rtol=1e-5, atol=1e-5), (loss, ref)

    # Test 2: ragged spatial size + bf16 inputs + two parallel spatial chunks
    # (multi-tile, tail mask, chunk over-coverage, in-kernel cast).
    N2, C2, D2, H2, W2 = 2, 4, 5, 6, 10          # S = 300, not a 128 multiple
    inputs2 = jax.random.uniform(k3, (N2, C2, D2, H2, W2)).astype(jnp.bfloat16)
    targets2 = (jax.random.uniform(k4, (N2, C2, D2, H2, W2)) > 0.5).astype(
        jnp.float32)
    loss2 = jax.block_until_ready(
        generalized_dice_loss(inputs2, targets2, tile_s=128))
    ref2 = _reference(inputs2, targets2)
    assert jnp.allclose(loss2, ref2, rtol=1e-4, atol=1e-5), (loss2, ref2)

    # Test 3: N*C not a multiple of 8 (ragged row block) + ragged tail, f32.
    N3, C3, D3, H3, W3 = 3, 3, 2, 5, 13          # NC = 9, S = 130
    inputs3 = jax.random.uniform(k5, (N3, C3, D3, H3, W3), dtype=jnp.float32)
    targets3 = (jax.random.uniform(k6, (N3, C3, D3, H3, W3)) > 0.5).astype(
        jnp.float32)
    loss3 = jax.block_until_ready(
        generalized_dice_loss(inputs3, targets3, tile_s=128))
    ref3 = _reference(inputs3, targets3)
    assert jnp.allclose(loss3, ref3, rtol=1e-5, atol=1e-5), (loss3, ref3)

    print("KERNEL_OK")
</pallas_src>

<mosaic_0001>
module attributes {stable_mosaic.version = 11 : i64} {
  func.func @_gdl_partial_kernel(%arg0: i32, %arg1: i32, %arg2: i32, %arg3: memref<8x256xf32, #tpu.memory_space<vmem>>, %arg4: memref<8x256xf32, #tpu.memory_space<vmem>>, %arg5: memref<1x8x3xf32, #tpu.memory_space<vmem>>, %arg6: memref<8x1xf32, #tpu.memory_space<vmem>>, %arg7: memref<8x1xf32, #tpu.memory_space<vmem>>, %arg8: memref<8x1xf32, #tpu.memory_space<vmem>>) attributes {dimension_semantics = [#tpu.dimension_semantics<parallel>, #tpu.dimension_semantics<parallel>, #tpu.dimension_semantics<arbitrary>], iteration_bounds = array<i64: 1, 1, 1>, scalar_prefetch = 0 : i64, scratch_operands = 3 : i64, tpu.core_type = #tpu.core_type<tc>, window_params = [{transform_indices = @transform_0, window_bounds = array<i64: 8, 256>}, {transform_indices = @transform_1, window_bounds = array<i64: 8, 256>}, {transform_indices = @transform_2, window_bounds = array<i64: 1, 8, 3>}]} {
    %c0_i32 = arith.constant 0 : i32
    %0 = arith.cmpi eq, %arg2, %c0_i32 : i32
    %1 = arith.extui %0 : i1 to i32
    %c0_i32_0 = arith.constant 0 : i32
    %2 = arith.cmpi ne, %1, %c0_i32_0 : i32
    scf.if %2 {
      %cst_20 = arith.constant 0.000000e+00 : f32
      %24 = vector.broadcast %cst_20 : f32 to vector<8x1xf32>
      %c0_21 = arith.constant 0 : index
      %c0_22 = arith.constant 0 : index
      %25 = vector.load %arg6[%c0_21, %c0_22] : memref<8x1xf32, #tpu.memory_space<vmem>>, vector<8x1xf32>
      tpu.vector_store %arg6[%c0_21, %c0_22], %24 {strides = array<i32>} : memref<8x1xf32, #tpu.memory_space<vmem>>, vector<8x1xf32>,
      %cst_23 = arith.constant 0.000000e+00 : f32
      %26 = vector.broadcast %cst_23 : f32 to vector<8x1xf32>
      %c0_24 = arith.constant 0 : index
      %c0_25 = arith.constant 0 : index
      %27 = vector.load %arg7[%c0_24, %c0_25] : memref<8x1xf32, #tpu.memory_space<vmem>>, vector<8x1xf32>
      tpu.vector_store %arg7[%c0_24, %c0_25], %26 {strides = array<i32>} : memref<8x1xf32, #tpu.memory_space<vmem>>, vector<8x1xf32>,
      %cst_26 = arith.constant 0.000000e+00 : f32
      %28 = vector.broadcast %cst_26 : f32 to vector<8x1xf32>
      %c0_27 = arith.constant 0 : index
      %c0_28 = arith.constant 0 : index
      %29 = vector.load %arg8[%c0_27, %c0_28] : memref<8x1xf32, #tpu.memory_space<vmem>>, vector<8x1xf32>
      tpu.vector_store %arg8[%c0_27, %c0_28], %28 {strides = array<i32>} : memref<8x1xf32, #tpu.memory_space<vmem>>, vector<8x1xf32>,
    } else {
    }
    %c0 = arith.constant 0 : index
    %c0_1 = arith.constant 0 : index
    %3 = vector.load %arg3[%c0, %c0_1] : memref<8x256xf32, #tpu.memory_space<vmem>>, vector<8x256xf32>
    %c0_2 = arith.constant 0 : index
    %c0_3 = arith.constant 0 : index
    %4 = vector.load %arg4[%c0_2, %c0_3] : memref<8x256xf32, #tpu.memory_space<vmem>>, vector<8x256xf32>
    %c0_4 = arith.constant 0 : index
    %c0_5 = arith.constant 0 : index
    %5 = vector.load %arg6[%c0_4, %c0_5] : memref<8x1xf32, #tpu.memory_space<vmem>>, vector<8x1xf32>
    %cst = arith.constant dense<0.000000e+00> : vector<8xf32>
    %6 = vector.multi_reduction <add>, %4, %cst [1] : vector<8x256xf32> to vector<8xf32>
    %7 = vector.shape_cast %6 : vector<8xf32> to vector<8x1xf32>
    %8 = arith.addf %5, %7 : vector<8x1xf32>
    %c0_6 = arith.constant 0 : index
    %c0_7 = arith.constant 0 : index
    %9 = vector.load %arg6[%c0_6, %c0_7] : memref<8x1xf32, #tpu.memory_space<vmem>>, vector<8x1xf32>
    tpu.vector_store %arg6[%c0_6, %c0_7], %8 {strides = array<i32>} : memref<8x1xf32, #tpu.memory_space<vmem>>, vector<8x1xf32>,
    %c0_8 = arith.constant 0 : index
    %c0_9 = arith.constant 0 : index
    %10 = vector.load %arg7[%c0_8, %c0_9] : memref<8x1xf32, #tpu.memory_space<vmem>>, vector<8x1xf32>
    %11 = arith.mulf %3, %4 : vector<8x256xf32>
    %cst_10 = arith.constant dense<0.000000e+00> : vector<8xf32>
    %12 = vector.multi_reduction <add>, %11, %cst_10 [1] : vector<8x256xf32> to vector<8xf32>
    %13 = vector.shape_cast %12 : vector<8xf32> to vector<8x1xf32>
    %14 = arith.addf %10, %13 : vector<8x1xf32>
    %c0_11 = arith.constant 0 : index
    %c0_12 = arith.constant 0 : index
    %15 = vector.load %arg7[%c0_11, %c0_12] : memref<8x1xf32, #tpu.memory_space<vmem>>, vector<8x1xf32>
    tpu.vector_store %arg7[%c0_11, %c0_12], %14 {strides = array<i32>} : memref<8x1xf32, #tpu.memory_space<vmem>>, vector<8x1xf32>,
    %c0_13 = arith.constant 0 : index
    %c0_14 = arith.constant 0 : index
    %16 = vector.load %arg8[%c0_13, %c0_14] : memref<8x1xf32, #tpu.memory_space<vmem>>, vector<8x1xf32>
    %cst_15 = arith.constant dense<0.000000e+00> : vector<8xf32>
    %17 = vector.multi_reduction <add>, %3, %cst_15 [1] : vector<8x256xf32> to vector<8xf32>
    %18 = vector.shape_cast %17 : vector<8xf32> to vector<8x1xf32>
    %19 = arith.addf %16, %18 : vector<8x1xf32>
    %c0_16 = arith.constant 0 : index
    %c0_17 = arith.constant 0 : index
    %20 = vector.load %arg8[%c0_16, %c0_17] : memref<8x1xf32, #tpu.memory_space<vmem>>, vector<8x1xf32>
    tpu.vector_store %arg8[%c0_16, %c0_17], %19 {strides = array<i32>} : memref<8x1xf32, #tpu.memory_space<vmem>>, vector<8x1xf32>,
    %c0_i32_18 = arith.constant 0 : i32
    %21 = arith.cmpi eq, %arg2, %c0_i32_18 : i32
    %22 = arith.extui %21 : i1 to i32
    %c0_i32_19 = arith.constant 0 : i32
    %23 = arith.cmpi ne, %22, %c0_i32_19 : i32
    scf.if %23 {
      %c0_20 = arith.constant 0 : index
      %c0_21 = arith.constant 0 : index
      %24 = vector.load %arg6[%c0_20, %c0_21] : memref<8x1xf32, #tpu.memory_space<vmem>>, vector<8x1xf32>
      %c0_22 = arith.constant 0 : index
      %c0_23 = arith.constant 0 : index
      %c0_24 = arith.constant 0 : index
      %25 = vector.load %arg5[%c0_22, %c0_23, %c0_24] : memref<1x8x3xf32, #tpu.memory_space<vmem>>, vector<1x8x1xf32>
      %26 = vector.shape_cast %25 : vector<1x8x1xf32> to vector<8x1xf32>
      %27 = vector.shape_cast %24 : vector<8x1xf32> to vector<1x8x1xf32>
      tpu.vector_store %arg5[%c0_22, %c0_23, %c0_24], %27 {strides = array<i32>} : memref<1x8x3xf32, #tpu.memory_space<vmem>>, vector<1x8x1xf32>,
      %c0_25 = arith.constant 0 : index
      %c0_26 = arith.constant 0 : index
      %28 = vector.load %arg7[%c0_25, %c0_26] : memref<8x1xf32, #tpu.memory_space<vmem>>, vector<8x1xf32>
      %c0_27 = arith.constant 0 : index
      %c0_28 = arith.constant 0 : index
      %c1 = arith.constant 1 : index
      %29 = vector.load %arg5[%c0_27, %c0_28, %c1] : memref<1x8x3xf32, #tpu.memory_space<vmem>>, vector<1x8x1xf32>
      %30 = vector.shape_cast %29 : vector<1x8x1xf32> to vector<8x1xf32>
      %31 = vector.shape_cast %28 : vector<8x1xf32> to vector<1x8x1xf32>
      tpu.vector_store %arg5[%c0_27, %c0_28, %c1], %31 {strides = array<i32>} : memref<1x8x3xf32, #tpu.memory_space<vmem>>, vector<1x8x1xf32>,
      %c0_29 = arith.constant 0 : index
      %c0_30 = arith.constant 0 : index
      %32 = vector.load %arg8[%c0_29, %c0_30] : memref<8x1xf32, #tpu.memory_space<vmem>>, vector<8x1xf32>
      %c0_31 = arith.constant 0 : index
      %c0_32 = arith.constant 0 : index
      %c2 = arith.constant 2 : index
      %33 = vector.load %arg5[%c0_31, %c0_32, %c2] : memref<1x8x3xf32, #tpu.memory_space<vmem>>, vector<1x8x1xf32>
      %34 = vector.shape_cast %33 : vector<1x8x1xf32> to vector<8x1xf32>
      %35 = vector.shape_cast %32 : vector<8x1xf32> to vector<1x8x1xf32>
      tpu.vector_store %arg5[%c0_31, %c0_32, %c2], %35 {strides = array<i32>} : memref<1x8x3xf32, #tpu.memory_space<vmem>>, vector<1x8x1xf32>,
    } else {
    }
    return
  }
  func.func @transform_0(%arg0: i32, %arg1: i32, %arg2: i32) -> (i32, i32) {
    %c1_i32 = arith.constant 1 : i32
    %0 = arith.muli %arg1, %c1_i32 : i32
    %1 = arith.addi %0, %arg2 : i32
    %c0_i32 = arith.constant 0 : i32
    %2 = arith.minsi %1, %c0_i32 : i32
    %c0_i32_0 = arith.constant 0 : i32
    return %arg0, %2 : i32, i32
  }
  func.func @transform_1(%arg0: i32, %arg1: i32, %arg2: i32) -> (i32, i32) {
    %c1_i32 = arith.constant 1 : i32
    %0 = arith.muli %arg1, %c1_i32 : i32
    %1 = arith.addi %0, %arg2 : i32
    %c0_i32 = arith.constant 0 : i32
    %2 = arith.minsi %1, %c0_i32 : i32
    %c0_i32_0 = arith.constant 0 : i32
    return %arg0, %2 : i32, i32
  }
  func.func @transform_2(%arg0: i32, %arg1: i32, %arg2: i32) -> (i32, i32, i32) {
    %c0_i32 = arith.constant 0 : i32
    %c0_i32_0 = arith.constant 0 : i32
    return %arg1, %arg0, %c0_i32 : i32, i32, i32
  }
}

</mosaic_0001>

<bundles_post_ra>
// kernel: generalized_dice_loss.1
= control target key start
LH: loop header
LB: loop body
LE: loop exit
PB: predicated region body
PF: predicated region fallthrough
CT: control target
= control target key end

     0   :  { %vm79_vm0 = vcmask 7168   ;;  %v146_v3 = vmov 0.0   ;;  %s147_s17 = smov 1   ;;  %s148_s18 = smov 2   ;;  %vm118_vm1 = vcmask 15368   ;;  %vm125_vm2 = vcmask 23568   ;;  %s192_s0 = inlined_call_operand.vmem [shape: f32[8,256], index: 0, kind: input, shape index: {}]   ;;  %s193_s1 = inlined_call_operand.vmem [shape: f32[8,256], index: 1, kind: input, shape index: {}]   ;;  %s194_s2 = inlined_call_operand.vmem [shape: f32[1,8,3], index: 2, kind: output, shape index: {}]  }
   0x1   :  { %v83_v0 = vld [vmem:[%s192_s0] sm:$0xff]  ;;  %v84_v1 = vld [vmem:[%s192_s0 + $0x8] sm:$0xff]  ;;  %81 = vst.msk [vmem:[#allocation3] sm:$0xff] %vm79_vm0, %v146_v3 }
   0x2   :  { %v85_v2 = vld [vmem:[%s193_s1] sm:$0xff]  ;;  %v86_v4 = vld [vmem:[%s193_s1 + $0x8] sm:$0xff]  ;;  %80 = vst.msk [vmem:[#allocation2] sm:$0xff] %vm79_vm0, %v146_v3  ;;  %v103_v9 = vadd.f32 %v84_v1, %v83_v0 }
   0x3   :  { %v95_v5 = vmul.f32 %v85_v2, %v83_v0  ;;  %v96_v6 = vmul.f32 %v86_v4, %v84_v1  ;;  %v88_v7 = vadd.f32 %v86_v4, %v85_v2  ;;  %82 = vst.msk [vmem:[#allocation4] sm:$0xff] %vm79_vm0, %v146_v3 }
   0x5   :  { %v97_v8 = vadd.f32 %v96_v6, %v95_v5  ;;  %89 = vadd.xlane.f32.xlu1 %v88_v7 }
   0x7   :  { %98 = vadd.xlane.f32.xlu0 %v97_v8 }
   0x8   :  { %v94_v11 = vld [vmem:[#allocation3] sm:$0xff] }
   0x9   :  { %v87_v10 = vld [vmem:[#allocation2] sm:$0xff] }
   0xa   :  { %v102_v16 = vld [vmem:[#allocation4] sm:$0xff] }
   0xf   :  { %104 = vadd.xlane.f32.xlu0 %v103_v9 }
  0x78   :  { %v90_v12 = vpop.xlane.xlu1 %89 }
  0x79   :  { %v91_v13 = vadd.f32 %v90_v12, %v87_v10 }
  0x7a   :  { %v99_v14 = vpop.xlane.xlu0 %98 }
  0x7b   :  { %v100_v15 = vadd.f32 %v99_v14, %v94_v11  ;;  %93 = vst.msk [vmem:[#allocation2] sm:$0xff] %vm79_vm0, %v91_v13 }
  0x7d   :  { %101 = vst.msk [vmem:[#allocation3] sm:$0xff] %vm79_vm0, %v100_v15 }
  0x82   :  { %v105_v17 = vpop.xlane.xlu0 %104  ;;  %v111_v18 = vld [vmem:[#allocation2] sm:$0xff] }
  0x83   :  { %v106_v19 = vadd.f32 %v105_v17, %v102_v16  ;;  %112 = vst.msk [vmem:[%s194_s2] sm:$0xff] %vm79_vm0, %v111_v18 }
  0x84   :  { %v113_v20 = vld [vmem:[#allocation3] sm:$0xff] }
  0x85   :  { %115 = vrot.lane.b32.xlu1 %v113_v20, %s147_s17  ;;  %107 = vst.msk [vmem:[#allocation4] sm:$0xff] %vm79_vm0, %v106_v19 }
  0x8c   :  { %v120_v21 = vld [vmem:[#allocation4] sm:$0xff] }
  0x8d   :  { %122 = vrot.lane.b32.xlu2 %v120_v21, %s148_s18 }
  0xe7   :  { %v123_v22 = vpop.permute.xlu2 %122 }
  0xf7   :  { %v116_v23 = vpop.permute.xlu1 %115 }
  0xf8   :  { %119 = vst.msk [vmem:[%s194_s2] sm:$0xff] %vm118_vm1, %v116_v23 }
  0xf9   :  { %126 = vst.msk [vmem:[%s194_s2] sm:$0xff] %vm125_vm2, %v123_v22 }

</bundles_post_ra>
